<compile_context>
chip_gen: v5e
topology: v5e:2x2
jax: 0.10.0
libtpu: 0.0.40
codegen_flags: <defaults>
</compile_context>

<pallas_src>
import functools

import jax
import jax.numpy as jnp
from jax.experimental import pallas as pl
from jax.experimental.pallas import tpu as pltpu


def _lstm_kernel(x_ref, wx_ref, wh_ref, b_ref, out_ref, xw_scr, *, T, H, Bblk):
    """LSTM forward for one batch block.

    x_ref  : (T, Bblk, Din) bf16  time-major inputs for this batch block
    wx_ref : (Din, 4H)      bf16  fused input weights, gate order [i, f, o, g]
    wh_ref : (H,   4H)      bf16  fused recurrent weights, same gate order
    b_ref  : (1,   4H)      f32   fused bias (bx + bh), applied once
    out_ref: (Bblk, T*H)    f32   row b = [h_0(b) | h_1(b) | ... | h_{T-1}(b)]
    xw_scr : (T, Bblk, 4H)  f32   VMEM scratch, time-major projection
    """
    Din = x_ref.shape[-1]

    # ---- Phase 1: hoisted input projection + bias for ALL timesteps in ONE
    # MXU matmul (off the recurrent critical path), stored time-major so each
    # recurrence step reads one contiguous (Bblk, 4H) tile.
    x2 = x_ref[...].reshape(T * Bblk, Din)          # leading-dim collapse only
    xw = jnp.dot(x2, wx_ref[...],
                 preferred_element_type=jnp.float32) + b_ref[...]
    xw_scr[...] = xw.reshape(T, Bblk, 4 * H)
    # TODO(synk): for large Din/T, chunk this projection over time and start
    # the recurrence on chunk 0 while the MXU computes later chunks (overlap),
    # and store xw_scr in bf16 to halve VMEM (re-check tolerance).

    wh = wh_ref[...]                 # (H, 4H) bf16, resident for all steps
    # TODO(synk): hold wh in MXU weight registers across steps via
    # pltpu.matmul_push_rhs / matmul_acc_lhs / matmul_pop (same-RHS/many-LHS).

    h = jnp.zeros((Bblk, H), jnp.float32)
    c = jnp.zeros((Bblk, H), jnp.float32)

    # How many consecutive h_t fit one 128-lane-aligned output store.
    group = (128 // H) if (H < 128 and 128 % H == 0) else 1
    pending = []

    # ---- Phase 2: the recurrence.  T is small and static -> fully unroll in
    # Python: no per-step grid/DMA bookkeeping, LLO scheduler sees across
    # timesteps.
    for t in range(T):
        gx = xw_scr[t]                                      # (Bblk, 4H) contiguous vld
        gates = gx + jnp.dot(h.astype(jnp.bfloat16), wh,
                             preferred_element_type=jnp.float32)   # (Bblk, 4H) f32

        if (3 * H) % 128 == 0:
            # Lane-aligned gate split: sigmoid only over [i,f,o], tanh only over g.
            sig = jax.nn.sigmoid(gates[:, :3 * H])
            g = jnp.tanh(gates[:, 3 * H:])
            i = sig[:, 0 * H:1 * H]
            f = sig[:, 1 * H:2 * H]
            o = sig[:, 2 * H:3 * H]
        else:
            # 4H spans <= one vreg: two full-width transcendental passes is optimal.
            sig = jax.nn.sigmoid(gates)
            th = jnp.tanh(gates)
            i = sig[:, 0 * H:1 * H]
            f = sig[:, 1 * H:2 * H]
            o = sig[:, 2 * H:3 * H]
            g = th[:, 3 * H:4 * H]

        c = f * c + i * g
        h = o * jnp.tanh(c)

        # Batch output stores into 128-lane-aligned slabs of the (Bblk, T*H)
        # lane-dense output block (single bulk HBM writeback after the body).
        pending.append(h)
        if len(pending) == group or t == T - 1:
            start = (t + 1 - len(pending)) * H
            blk = pending[0] if len(pending) == 1 else jnp.concatenate(pending, axis=1)
            out_ref[:, start:start + blk.shape[1]] = blk.astype(out_ref.dtype)
            pending = []


def lstm_forward(x, wx, wh, b):
    """x: (B, T, Din) f32; wx: (Din, 4H); wh: (H, 4H); b: (1, 4H).

    Returns (B, T, H) f32."""
    B, T, Din = x.shape
    H = wh.shape[0]

    # One-time reorder to time-major + bf16 cast (paid once, off the
    # recurrent critical path; the kernel already computed in bf16 before).
    x_tm = jnp.transpose(x, (1, 0, 2)).astype(jnp.bfloat16)     # (T, B, Din)
    wx_b = wx.astype(jnp.bfloat16)
    wh_b = wh.astype(jnp.bfloat16)

    # Batch elements are fully independent: split them across a parallel grid
    # axis so v7x's two TensorCores each run half (keeps (8,128)-aligned
    # blocks).  At small B this is grid=(1,) -> no-op on v5e/v6e.
    if B >= 16 and B % 16 == 0:
        b_blocks = 2
    else:
        b_blocks = 1
    Bblk = B // b_blocks

    # Explicit VMEM budget (defaults: 16 MiB v5e / 32 MiB v6e,v7x scoped).
    vmem_bytes = (
        2 * T * Bblk * Din * 2            # x block (bf16, double-buffered)
        + (Din + H) * 4 * H * 2           # weights (bf16)
        + 4 * H * 4                       # bias (f32)
        + 2 * Bblk * T * H * 4            # out block (f32, double-buffered)
        + T * Bblk * 4 * H * 4            # time-major projection scratch (f32)
    )
    vmem_limit = int(min(64 * 1024 * 1024, max(2 * vmem_bytes, 4 * 1024 * 1024)))
    # TODO(synk): for large B*T*4H, chunk the time axis (grid axis marked
    # "arbitrary", h/c carried in VMEM scratch) instead of one whole-T scratch.

    out_flat = pl.pallas_call(
        functools.partial(_lstm_kernel, T=T, H=H, Bblk=Bblk),
        out_shape=jax.ShapeDtypeStruct((B, T * H), jnp.float32),
        grid_spec=pltpu.PrefetchScalarGridSpec(
            num_scalar_prefetch=0,
            grid=(b_blocks,),
            in_specs=[
                pl.BlockSpec((T, Bblk, Din), lambda i: (0, i, 0)),   # x (time-major)
                pl.BlockSpec((Din, 4 * H), lambda i: (0, 0)),        # wx (full)
                pl.BlockSpec((H, 4 * H), lambda i: (0, 0)),          # wh (full)
                pl.BlockSpec((1, 4 * H), lambda i: (0, 0)),          # bias (full)
            ],
            out_specs=pl.BlockSpec((Bblk, T * H), lambda i: (i, 0)),
            scratch_shapes=[pltpu.VMEM((T, Bblk, 4 * H), jnp.float32)],
        ),
        compiler_params=pltpu.CompilerParams(
            dimension_semantics=("parallel",),
            vmem_limit_bytes=vmem_limit,
        ),
    )(x_tm, wx_b, wh_b, b)

    # Free (contiguous) reshape back to (B, T, H).
    return out_flat.reshape(B, T, H)


def make_params(key, input_dim, output_dim):
    """Deterministic synthetic weights for the 8 nn.Linear layers, fused.

    PyTorch Linear stores weight as (out, in); here we build the transposed
    (in, out) blocks directly and concat in gate order [i, f, o, g]."""
    keys = jax.random.split(key, 16)
    H, Din = output_dim, input_dim

    def lin(kw, kb, fan_in):
        bound = 1.0 / jnp.sqrt(fan_in)
        w = jax.random.uniform(kw, (fan_in, H), jnp.float32, -bound, bound)
        bb = jax.random.uniform(kb, (H,), jnp.float32, -bound, bound)
        return w, bb

    # gate order: i, f, o, g
    wix, bix = lin(keys[0], keys[1], Din)
    wfx, bfx = lin(keys[2], keys[3], Din)
    wox, box = lin(keys[4], keys[5], Din)
    wgx, bgx = lin(keys[6], keys[7], Din)
    wih, bih = lin(keys[8], keys[9], H)
    wfh, bfh = lin(keys[10], keys[11], H)
    woh, boh = lin(keys[12], keys[13], H)
    wgh, bgh = lin(keys[14], keys[15], H)

    wx = jnp.concatenate([wix, wfx, wox, wgx], axis=1)          # (Din, 4H)
    wh = jnp.concatenate([wih, wfh, woh, wgh], axis=1)          # (H, 4H)
    b = jnp.concatenate([bix + bih, bfx + bfh, box + boh, bgx + bgh])[None, :]
    return wx, wh, b


def lstm_ref(x, wx, wh, b):
    """Plain-JAX f32 reference (same math as the PyTorch module)."""
    B, T, Din = x.shape
    H = wh.shape[0]

    def step(carry, x_t):
        h, c = carry
        gates = x_t @ wx + h @ wh + b
        i = jax.nn.sigmoid(gates[:, 0 * H:1 * H])
        f = jax.nn.sigmoid(gates[:, 1 * H:2 * H])
        o = jax.nn.sigmoid(gates[:, 2 * H:3 * H])
        g = jnp.tanh(gates[:, 3 * H:4 * H])
        c = f * c + i * g
        h = o * jnp.tanh(c)
        return (h, c), h

    h0 = jnp.zeros((B, H), jnp.float32)
    c0 = jnp.zeros((B, H), jnp.float32)
    _, ys = jax.lax.scan(step, (h0, c0), jnp.transpose(x, (1, 0, 2)))
    return jnp.transpose(ys, (1, 0, 2))


if __name__ == "__main__":
    batch_size = 8
    seq_len = 8
    input_dim = 16
    hidden_dim = 32   # NOTE: unused by the PyTorch module's forward path
    output_dim = 32

    key = jax.random.PRNGKey(0)
    kx, kp = jax.random.split(key)
    x = jax.random.normal(kx, (batch_size, seq_len, input_dim), jnp.float32)
    wx, wh, b = make_params(kp, input_dim, output_dim)

    out = lstm_forward(x, wx, wh, b)
    out = jax.block_until_ready(out)

    ref = lstm_ref(x, wx, wh, b)
    assert out.shape == (batch_size, seq_len, output_dim)
    # bf16 matmul operands (f32 accumulation) vs. pure-f32 reference.
    max_err = float(jnp.max(jnp.abs(out - ref)))
    assert max_err < 2e-2, f"max abs err {max_err}"

    print("KERNEL_OK")
</pallas_src>

<mosaic_0001>
module attributes {stable_mosaic.version = 11 : i64} {
  func.func @_lstm_kernel(%arg0: i32, %arg1: memref<8x8x16xbf16, #tpu.memory_space<vmem>>, %arg2: memref<16x128xbf16, #tpu.memory_space<vmem>>, %arg3: memref<32x128xbf16, #tpu.memory_space<vmem>>, %arg4: memref<1x128xf32, #tpu.memory_space<vmem>>, %arg5: memref<8x256xf32, #tpu.memory_space<vmem>>, %arg6: memref<8x8x128xf32, #tpu.memory_space<vmem>>) attributes {dimension_semantics = [#tpu.dimension_semantics<parallel>], iteration_bounds = array<i64: 1>, scalar_prefetch = 0 : i64, scratch_operands = 1 : i64, tpu.core_type = #tpu.core_type<tc>, window_params = [{transform_indices = @transform_0, window_bounds = array<i64: 8, 8, 16>}, {pipeline_mode = #tpu.pipeline_mode<synchronous>, transform_indices = @transform_1, window_bounds = array<i64: 16, 128>}, {pipeline_mode = #tpu.pipeline_mode<synchronous>, transform_indices = @transform_2, window_bounds = array<i64: 32, 128>}, {pipeline_mode = #tpu.pipeline_mode<synchronous>, transform_indices = @transform_3, window_bounds = array<i64: 1, 128>}, {transform_indices = @transform_4, window_bounds = array<i64: 8, 256>}]} {
    %c0 = arith.constant 0 : index
    %c0_0 = arith.constant 0 : index
    %c0_1 = arith.constant 0 : index
    %0 = vector.load %arg1[%c0, %c0_0, %c0_1] : memref<8x8x16xbf16, #tpu.memory_space<vmem>>, vector<8x8x16xbf16>
    %1 = vector.shape_cast %0 : vector<8x8x16xbf16> to vector<64x16xbf16>
    %c0_2 = arith.constant 0 : index
    %c0_3 = arith.constant 0 : index
    %2 = vector.load %arg2[%c0_2, %c0_3] : memref<16x128xbf16, #tpu.memory_space<vmem>>, vector<16x128xbf16>
    %cst = arith.constant dense<0.000000e+00> : vector<64x128xf32>
    %3 = tpu.matmul %1, %2, %cst {dimension_numbers = #tpu.dot_dimension_numbers<[1], [0], [0], [1], [0, 0, 1, 1], [], []>} : vector<64x16xbf16>, vector<16x128xbf16>, vector<64x128xf32> -> vector<64x128xf32>
    %c0_4 = arith.constant 0 : index
    %c0_5 = arith.constant 0 : index
    %4 = vector.load %arg4[%c0_4, %c0_5] : memref<1x128xf32, #tpu.memory_space<vmem>>, vector<1x128xf32>
    %5 = vector.broadcast %4 : vector<1x128xf32> to vector<64x128xf32>
    %6 = arith.addf %3, %5 : vector<64x128xf32>
    %7 = vector.shape_cast %6 : vector<64x128xf32> to vector<8x8x128xf32>
    %c0_6 = arith.constant 0 : index
    %c0_7 = arith.constant 0 : index
    %c0_8 = arith.constant 0 : index
    %8 = vector.load %arg6[%c0_6, %c0_7, %c0_8] : memref<8x8x128xf32, #tpu.memory_space<vmem>>, vector<8x8x128xf32>
    tpu.vector_store %arg6[%c0_6, %c0_7, %c0_8], %7 {strides = array<i32>} : memref<8x8x128xf32, #tpu.memory_space<vmem>>, vector<8x8x128xf32>,
    %c0_9 = arith.constant 0 : index
    %c0_10 = arith.constant 0 : index
    %9 = vector.load %arg3[%c0_9, %c0_10] : memref<32x128xbf16, #tpu.memory_space<vmem>>, vector<32x128xbf16>
    %cst_11 = arith.constant 0.000000e+00 : f32
    %10 = vector.broadcast %cst_11 : f32 to vector<8x32xf32>
    %cst_12 = arith.constant 0.000000e+00 : f32
    %11 = vector.broadcast %cst_12 : f32 to vector<8x32xf32>
    %c0_13 = arith.constant 0 : index
    %c0_14 = arith.constant 0 : index
    %c0_15 = arith.constant 0 : index
    %12 = vector.load %arg6[%c0_13, %c0_14, %c0_15] : memref<8x8x128xf32, #tpu.memory_space<vmem>>, vector<1x8x128xf32>
    %13 = vector.shape_cast %12 : vector<1x8x128xf32> to vector<8x128xf32>
    %14 = arith.truncf %10 : vector<8x32xf32> to vector<8x32xbf16>
    %cst_16 = arith.constant dense<0.000000e+00> : vector<8x128xf32>
    %15 = tpu.matmul %14, %9, %cst_16 {dimension_numbers = #tpu.dot_dimension_numbers<[1], [0], [0], [1], [0, 0, 1, 1], [], []>} : vector<8x32xbf16>, vector<32x128xbf16>, vector<8x128xf32> -> vector<8x128xf32>
    %16 = arith.addf %13, %15 : vector<8x128xf32>
    %17 = arith.negf %16 : vector<8x128xf32>
    %18 = math.exp %17 : vector<8x128xf32>
    %cst_17 = arith.constant 1.000000e+00 : f32
    %19 = vector.broadcast %cst_17 : f32 to vector<8x128xf32>
    %20 = arith.addf %19, %18 : vector<8x128xf32>
    %21 = arith.divf %19, %20 : vector<8x128xf32>
    %22 = math.tanh %16 : vector<8x128xf32>
    %23 = vector.extract_strided_slice %21 {offsets = [0, 0], sizes = [8, 32], strides = [1, 1]} : vector<8x128xf32> to vector<8x32xf32>
    %24 = vector.extract_strided_slice %21 {offsets = [0, 32], sizes = [8, 32], strides = [1, 1]} : vector<8x128xf32> to vector<8x32xf32>
    %25 = vector.extract_strided_slice %21 {offsets = [0, 64], sizes = [8, 32], strides = [1, 1]} : vector<8x128xf32> to vector<8x32xf32>
    %26 = vector.extract_strided_slice %22 {offsets = [0, 96], sizes = [8, 32], strides = [1, 1]} : vector<8x128xf32> to vector<8x32xf32>
    %27 = arith.mulf %24, %11 : vector<8x32xf32>
    %28 = arith.mulf %23, %26 : vector<8x32xf32>
    %29 = arith.addf %27, %28 : vector<8x32xf32>
    %30 = math.tanh %29 : vector<8x32xf32>
    %31 = arith.mulf %25, %30 : vector<8x32xf32>
    %c1 = arith.constant 1 : index
    %c0_18 = arith.constant 0 : index
    %c0_19 = arith.constant 0 : index
    %32 = vector.load %arg6[%c1, %c0_18, %c0_19] : memref<8x8x128xf32, #tpu.memory_space<vmem>>, vector<1x8x128xf32>
    %33 = vector.shape_cast %32 : vector<1x8x128xf32> to vector<8x128xf32>
    %34 = arith.truncf %31 : vector<8x32xf32> to vector<8x32xbf16>
    %cst_20 = arith.constant dense<0.000000e+00> : vector<8x128xf32>
    %35 = tpu.matmul %34, %9, %cst_20 {dimension_numbers = #tpu.dot_dimension_numbers<[1], [0], [0], [1], [0, 0, 1, 1], [], []>} : vector<8x32xbf16>, vector<32x128xbf16>, vector<8x128xf32> -> vector<8x128xf32>
    %36 = arith.addf %33, %35 : vector<8x128xf32>
    %37 = arith.negf %36 : vector<8x128xf32>
    %38 = math.exp %37 : vector<8x128xf32>
    %cst_21 = arith.constant 1.000000e+00 : f32
    %39 = vector.broadcast %cst_21 : f32 to vector<8x128xf32>
    %40 = arith.addf %39, %38 : vector<8x128xf32>
    %41 = arith.divf %39, %40 : vector<8x128xf32>
    %42 = math.tanh %36 : vector<8x128xf32>
    %43 = vector.extract_strided_slice %41 {offsets = [0, 0], sizes = [8, 32], strides = [1, 1]} : vector<8x128xf32> to vector<8x32xf32>
    %44 = vector.extract_strided_slice %41 {offsets = [0, 32], sizes = [8, 32], strides = [1, 1]} : vector<8x128xf32> to vector<8x32xf32>
    %45 = vector.extract_strided_slice %41 {offsets = [0, 64], sizes = [8, 32], strides = [1, 1]} : vector<8x128xf32> to vector<8x32xf32>
    %46 = vector.extract_strided_slice %42 {offsets = [0, 96], sizes = [8, 32], strides = [1, 1]} : vector<8x128xf32> to vector<8x32xf32>
    %47 = arith.mulf %44, %29 : vector<8x32xf32>
    %48 = arith.mulf %43, %46 : vector<8x32xf32>
    %49 = arith.addf %47, %48 : vector<8x32xf32>
    %50 = math.tanh %49 : vector<8x32xf32>
    %51 = arith.mulf %45, %50 : vector<8x32xf32>
    %c2 = arith.constant 2 : index
    %c0_22 = arith.constant 0 : index
    %c0_23 = arith.constant 0 : index
    %52 = vector.load %arg6[%c2, %c0_22, %c0_23] : memref<8x8x128xf32, #tpu.memory_space<vmem>>, vector<1x8x128xf32>
    %53 = vector.shape_cast %52 : vector<1x8x128xf32> to vector<8x128xf32>
    %54 = arith.truncf %51 : vector<8x32xf32> to vector<8x32xbf16>
    %cst_24 = arith.constant dense<0.000000e+00> : vector<8x128xf32>
    %55 = tpu.matmul %54, %9, %cst_24 {dimension_numbers = #tpu.dot_dimension_numbers<[1], [0], [0], [1], [0, 0, 1, 1], [], []>} : vector<8x32xbf16>, vector<32x128xbf16>, vector<8x128xf32> -> vector<8x128xf32>
    %56 = arith.addf %53, %55 : vector<8x128xf32>
    %57 = arith.negf %56 : vector<8x128xf32>
    %58 = math.exp %57 : vector<8x128xf32>
    %cst_25 = arith.constant 1.000000e+00 : f32
    %59 = vector.broadcast %cst_25 : f32 to vector<8x128xf32>
    %60 = arith.addf %59, %58 : vector<8x128xf32>
    %61 = arith.divf %59, %60 : vector<8x128xf32>
    %62 = math.tanh %56 : vector<8x128xf32>
    %63 = vector.extract_strided_slice %61 {offsets = [0, 0], sizes = [8, 32], strides = [1, 1]} : vector<8x128xf32> to vector<8x32xf32>
    %64 = vector.extract_strided_slice %61 {offsets = [0, 32], sizes = [8, 32], strides = [1, 1]} : vector<8x128xf32> to vector<8x32xf32>
    %65 = vector.extract_strided_slice %61 {offsets = [0, 64], sizes = [8, 32], strides = [1, 1]} : vector<8x128xf32> to vector<8x32xf32>
    %66 = vector.extract_strided_slice %62 {offsets = [0, 96], sizes = [8, 32], strides = [1, 1]} : vector<8x128xf32> to vector<8x32xf32>
    %67 = arith.mulf %64, %49 : vector<8x32xf32>
    %68 = arith.mulf %63, %66 : vector<8x32xf32>
    %69 = arith.addf %67, %68 : vector<8x32xf32>
    %70 = math.tanh %69 : vector<8x32xf32>
    %71 = arith.mulf %65, %70 : vector<8x32xf32>
    %c3 = arith.constant 3 : index
    %c0_26 = arith.constant 0 : index
    %c0_27 = arith.constant 0 : index
    %72 = vector.load %arg6[%c3, %c0_26, %c0_27] : memref<8x8x128xf32, #tpu.memory_space<vmem>>, vector<1x8x128xf32>
    %73 = vector.shape_cast %72 : vector<1x8x128xf32> to vector<8x128xf32>
    %74 = arith.truncf %71 : vector<8x32xf32> to vector<8x32xbf16>
    %cst_28 = arith.constant dense<0.000000e+00> : vector<8x128xf32>
    %75 = tpu.matmul %74, %9, %cst_28 {dimension_numbers = #tpu.dot_dimension_numbers<[1], [0], [0], [1], [0, 0, 1, 1], [], []>} : vector<8x32xbf16>, vector<32x128xbf16>, vector<8x128xf32> -> vector<8x128xf32>
    %76 = arith.addf %73, %75 : vector<8x128xf32>
    %77 = arith.negf %76 : vector<8x128xf32>
    %78 = math.exp %77 : vector<8x128xf32>
    %cst_29 = arith.constant 1.000000e+00 : f32
    %79 = vector.broadcast %cst_29 : f32 to vector<8x128xf32>
    %80 = arith.addf %79, %78 : vector<8x128xf32>
    %81 = arith.divf %79, %80 : vector<8x128xf32>
    %82 = math.tanh %76 : vector<8x128xf32>
    %83 = vector.extract_strided_slice %81 {offsets = [0, 0], sizes = [8, 32], strides = [1, 1]} : vector<8x128xf32> to vector<8x32xf32>
    %84 = vector.extract_strided_slice %81 {offsets = [0, 32], sizes = [8, 32], strides = [1, 1]} : vector<8x128xf32> to vector<8x32xf32>
    %85 = vector.extract_strided_slice %81 {offsets = [0, 64], sizes = [8, 32], strides = [1, 1]} : vector<8x128xf32> to vector<8x32xf32>
    %86 = vector.extract_strided_slice %82 {offsets = [0, 96], sizes = [8, 32], strides = [1, 1]} : vector<8x128xf32> to vector<8x32xf32>
    %87 = arith.mulf %84, %69 : vector<8x32xf32>
    %88 = arith.mulf %83, %86 : vector<8x32xf32>
    %89 = arith.addf %87, %88 : vector<8x32xf32>
    %90 = math.tanh %89 : vector<8x32xf32>
    %91 = arith.mulf %85, %90 : vector<8x32xf32>
    %92 = tpu.concatenate %31, %51, %71, %91 in 1 : vector<8x32xf32>, vector<8x32xf32>, vector<8x32xf32>, vector<8x32xf32> -> vector<8x128xf32>
    %c0_30 = arith.constant 0 : index
    %c0_31 = arith.constant 0 : index
    %93 = vector.load %arg5[%c0_30, %c0_31] : memref<8x256xf32, #tpu.memory_space<vmem>>, vector<8x128xf32>
    tpu.vector_store %arg5[%c0_30, %c0_31], %92 {strides = array<i32>} : memref<8x256xf32, #tpu.memory_space<vmem>>, vector<8x128xf32>,
    %c4 = arith.constant 4 : index
    %c0_32 = arith.constant 0 : index
    %c0_33 = arith.constant 0 : index
    %94 = vector.load %arg6[%c4, %c0_32, %c0_33] : memref<8x8x128xf32, #tpu.memory_space<vmem>>, vector<1x8x128xf32>
    %95 = vector.shape_cast %94 : vector<1x8x128xf32> to vector<8x128xf32>
    %96 = arith.truncf %91 : vector<8x32xf32> to vector<8x32xbf16>
    %cst_34 = arith.constant dense<0.000000e+00> : vector<8x128xf32>
    %97 = tpu.matmul %96, %9, %cst_34 {dimension_numbers = #tpu.dot_dimension_numbers<[1], [0], [0], [1], [0, 0, 1, 1], [], []>} : vector<8x32xbf16>, vector<32x128xbf16>, vector<8x128xf32> -> vector<8x128xf32>
    %98 = arith.addf %95, %97 : vector<8x128xf32>
    %99 = arith.negf %98 : vector<8x128xf32>
    %100 = math.exp %99 : vector<8x128xf32>
    %cst_35 = arith.constant 1.000000e+00 : f32
    %101 = vector.broadcast %cst_35 : f32 to vector<8x128xf32>
    %102 = arith.addf %101, %100 : vector<8x128xf32>
    %103 = arith.divf %101, %102 : vector<8x128xf32>
    %104 = math.tanh %98 : vector<8x128xf32>
    %105 = vector.extract_strided_slice %103 {offsets = [0, 0], sizes = [8, 32], strides = [1, 1]} : vector<8x128xf32> to vector<8x32xf32>
    %106 = vector.extract_strided_slice %103 {offsets = [0, 32], sizes = [8, 32], strides = [1, 1]} : vector<8x128xf32> to vector<8x32xf32>
    %107 = vector.extract_strided_slice %103 {offsets = [0, 64], sizes = [8, 32], strides = [1, 1]} : vector<8x128xf32> to vector<8x32xf32>
    %108 = vector.extract_strided_slice %104 {offsets = [0, 96], sizes = [8, 32], strides = [1, 1]} : vector<8x128xf32> to vector<8x32xf32>
    %109 = arith.mulf %106, %89 : vector<8x32xf32>
    %110 = arith.mulf %105, %108 : vector<8x32xf32>
    %111 = arith.addf %109, %110 : vector<8x32xf32>
    %112 = math.tanh %111 : vector<8x32xf32>
    %113 = arith.mulf %107, %112 : vector<8x32xf32>
    %c5 = arith.constant 5 : index
    %c0_36 = arith.constant 0 : index
    %c0_37 = arith.constant 0 : index
    %114 = vector.load %arg6[%c5, %c0_36, %c0_37] : memref<8x8x128xf32, #tpu.memory_space<vmem>>, vector<1x8x128xf32>
    %115 = vector.shape_cast %114 : vector<1x8x128xf32> to vector<8x128xf32>
    %116 = arith.truncf %113 : vector<8x32xf32> to vector<8x32xbf16>
    %cst_38 = arith.constant dense<0.000000e+00> : vector<8x128xf32>
    %117 = tpu.matmul %116, %9, %cst_38 {dimension_numbers = #tpu.dot_dimension_numbers<[1], [0], [0], [1], [0, 0, 1, 1], [], []>} : vector<8x32xbf16>, vector<32x128xbf16>, vector<8x128xf32> -> vector<8x128xf32>
    %118 = arith.addf %115, %117 : vector<8x128xf32>
    %119 = arith.negf %118 : vector<8x128xf32>
    %120 = math.exp %119 : vector<8x128xf32>
    %cst_39 = arith.constant 1.000000e+00 : f32
    %121 = vector.broadcast %cst_39 : f32 to vector<8x128xf32>
    %122 = arith.addf %121, %120 : vector<8x128xf32>
    %123 = arith.divf %121, %122 : vector<8x128xf32>
    %124 = math.tanh %118 : vector<8x128xf32>
    %125 = vector.extract_strided_slice %123 {offsets = [0, 0], sizes = [8, 32], strides = [1, 1]} : vector<8x128xf32> to vector<8x32xf32>
    %126 = vector.extract_strided_slice %123 {offsets = [0, 32], sizes = [8, 32], strides = [1, 1]} : vector<8x128xf32> to vector<8x32xf32>
    %127 = vector.extract_strided_slice %123 {offsets = [0, 64], sizes = [8, 32], strides = [1, 1]} : vector<8x128xf32> to vector<8x32xf32>
    %128 = vector.extract_strided_slice %124 {offsets = [0, 96], sizes = [8, 32], strides = [1, 1]} : vector<8x128xf32> to vector<8x32xf32>
    %129 = arith.mulf %126, %111 : vector<8x32xf32>
    %130 = arith.mulf %125, %128 : vector<8x32xf32>
    %131 = arith.addf %129, %130 : vector<8x32xf32>
    %132 = math.tanh %131 : vector<8x32xf32>
    %133 = arith.mulf %127, %132 : vector<8x32xf32>
    %c6 = arith.constant 6 : index
    %c0_40 = arith.constant 0 : index
    %c0_41 = arith.constant 0 : index
    %134 = vector.load %arg6[%c6, %c0_40, %c0_41] : memref<8x8x128xf32, #tpu.memory_space<vmem>>, vector<1x8x128xf32>
    %135 = vector.shape_cast %134 : vector<1x8x128xf32> to vector<8x128xf32>
    %136 = arith.truncf %133 : vector<8x32xf32> to vector<8x32xbf16>
    %cst_42 = arith.constant dense<0.000000e+00> : vector<8x128xf32>
    %137 = tpu.matmul %136, %9, %cst_42 {dimension_numbers = #tpu.dot_dimension_numbers<[1], [0], [0], [1], [0, 0, 1, 1], [], []>} : vector<8x32xbf16>, vector<32x128xbf16>, vector<8x128xf32> -> vector<8x128xf32>
    %138 = arith.addf %135, %137 : vector<8x128xf32>
    %139 = arith.negf %138 : vector<8x128xf32>
    %140 = math.exp %139 : vector<8x128xf32>
    %cst_43 = arith.constant 1.000000e+00 : f32
    %141 = vector.broadcast %cst_43 : f32 to vector<8x128xf32>
    %142 = arith.addf %141, %140 : vector<8x128xf32>
    %143 = arith.divf %141, %142 : vector<8x128xf32>
    %144 = math.tanh %138 : vector<8x128xf32>
    %145 = vector.extract_strided_slice %143 {offsets = [0, 0], sizes = [8, 32], strides = [1, 1]} : vector<8x128xf32> to vector<8x32xf32>
    %146 = vector.extract_strided_slice %143 {offsets = [0, 32], sizes = [8, 32], strides = [1, 1]} : vector<8x128xf32> to vector<8x32xf32>
    %147 = vector.extract_strided_slice %143 {offsets = [0, 64], sizes = [8, 32], strides = [1, 1]} : vector<8x128xf32> to vector<8x32xf32>
    %148 = vector.extract_strided_slice %144 {offsets = [0, 96], sizes = [8, 32], strides = [1, 1]} : vector<8x128xf32> to vector<8x32xf32>
    %149 = arith.mulf %146, %131 : vector<8x32xf32>
    %150 = arith.mulf %145, %148 : vector<8x32xf32>
    %151 = arith.addf %149, %150 : vector<8x32xf32>
    %152 = math.tanh %151 : vector<8x32xf32>
    %153 = arith.mulf %147, %152 : vector<8x32xf32>
    %c7 = arith.constant 7 : index
    %c0_44 = arith.constant 0 : index
    %c0_45 = arith.constant 0 : index
    %154 = vector.load %arg6[%c7, %c0_44, %c0_45] : memref<8x8x128xf32, #tpu.memory_space<vmem>>, vector<1x8x128xf32>
    %155 = vector.shape_cast %154 : vector<1x8x128xf32> to vector<8x128xf32>
    %156 = arith.truncf %153 : vector<8x32xf32> to vector<8x32xbf16>
    %cst_46 = arith.constant dense<0.000000e+00> : vector<8x128xf32>
    %157 = tpu.matmul %156, %9, %cst_46 {dimension_numbers = #tpu.dot_dimension_numbers<[1], [0], [0], [1], [0, 0, 1, 1], [], []>} : vector<8x32xbf16>, vector<32x128xbf16>, vector<8x128xf32> -> vector<8x128xf32>
    %158 = arith.addf %155, %157 : vector<8x128xf32>
    %159 = arith.negf %158 : vector<8x128xf32>
    %160 = math.exp %159 : vector<8x128xf32>
    %cst_47 = arith.constant 1.000000e+00 : f32
    %161 = vector.broadcast %cst_47 : f32 to vector<8x128xf32>
    %162 = arith.addf %161, %160 : vector<8x128xf32>
    %163 = arith.divf %161, %162 : vector<8x128xf32>
    %164 = math.tanh %158 : vector<8x128xf32>
    %165 = vector.extract_strided_slice %163 {offsets = [0, 0], sizes = [8, 32], strides = [1, 1]} : vector<8x128xf32> to vector<8x32xf32>
    %166 = vector.extract_strided_slice %163 {offsets = [0, 32], sizes = [8, 32], strides = [1, 1]} : vector<8x128xf32> to vector<8x32xf32>
    %167 = vector.extract_strided_slice %163 {offsets = [0, 64], sizes = [8, 32], strides = [1, 1]} : vector<8x128xf32> to vector<8x32xf32>
    %168 = vector.extract_strided_slice %164 {offsets = [0, 96], sizes = [8, 32], strides = [1, 1]} : vector<8x128xf32> to vector<8x32xf32>
    %169 = arith.mulf %166, %151 : vector<8x32xf32>
    %170 = arith.mulf %165, %168 : vector<8x32xf32>
    %171 = arith.addf %169, %170 : vector<8x32xf32>
    %172 = math.tanh %171 : vector<8x32xf32>
    %173 = arith.mulf %167, %172 : vector<8x32xf32>
    %174 = tpu.concatenate %113, %133, %153, %173 in 1 : vector<8x32xf32>, vector<8x32xf32>, vector<8x32xf32>, vector<8x32xf32> -> vector<8x128xf32>
    %c0_48 = arith.constant 0 : index
    %c128 = arith.constant 128 : index
    %175 = vector.load %arg5[%c0_48, %c128] : memref<8x256xf32, #tpu.memory_space<vmem>>, vector<8x128xf32>
    tpu.vector_store %arg5[%c0_48, %c128], %174 {strides = array<i32>} : memref<8x256xf32, #tpu.memory_space<vmem>>, vector<8x128xf32>,
    return
  }
  func.func @transform_0(%arg0: i32) -> (i32, i32, i32) {
    %c0_i32 = arith.constant 0 : i32
    %c0_i32_0 = arith.constant 0 : i32
    %c0_i32_1 = arith.constant 0 : i32
    return %c0_i32, %arg0, %c0_i32_0 : i32, i32, i32
  }
  func.func @transform_1(%arg0: i32) -> (i32, i32) {
    %c0_i32 = arith.constant 0 : i32
    %c0_i32_0 = arith.constant 0 : i32
    %c0_i32_1 = arith.constant 0 : i32
    return %c0_i32, %c0_i32_0 : i32, i32
  }
  func.func @transform_2(%arg0: i32) -> (i32, i32) {
    %c0_i32 = arith.constant 0 : i32
    %c0_i32_0 = arith.constant 0 : i32
    %c0_i32_1 = arith.constant 0 : i32
    return %c0_i32, %c0_i32_0 : i32, i32
  }
  func.func @transform_3(%arg0: i32) -> (i32, i32) {
    %c0_i32 = arith.constant 0 : i32
    %c0_i32_0 = arith.constant 0 : i32
    %c0_i32_1 = arith.constant 0 : i32
    return %c0_i32, %c0_i32_0 : i32, i32
  }
  func.func @transform_4(%arg0: i32) -> (i32, i32) {
    %c0_i32 = arith.constant 0 : i32
    %c0_i32_0 = arith.constant 0 : i32
    return %arg0, %c0_i32 : i32, i32
  }
}

</mosaic_0001>

<bundles_post_ra>
// kernel: tpu_custom_call.1
= control target key start
LH: loop header
LB: loop body
LE: loop exit
PB: predicated region body
PF: predicated region fallthrough
CT: control target
= control target key end

     0   :  { %9 = vsyncpa [#allocation4], 0  ;;  %s1087_s0 = inlined_call_operand.hbm [shape: bf16[8,8,16], index: 0, kind: input, shape index: {}]   ;;  %s1088_s1 = inlined_call_operand.hbm [shape: bf16[16,128], index: 1, kind: input, shape index: {}]   ;;  %s1089_s2 = inlined_call_operand.hbm [shape: bf16[32,128], index: 2, kind: input, shape index: {}]   ;;  %s1090_s3 = inlined_call_operand.vmem [shape: f32[1,128], index: 3, kind: input, shape index: {}]   ;;  %s1091_s4 = inlined_call_operand.hbm [shape: f32[8,256], index: 4, kind: output, shape index: {}]  }
   0x1   :  { %10 = vsyncpa [#allocation7], 0 }
   0x2   :  { %11 = vsyncpa [#allocation5], 0  ;;  %s29_s17 = sshll.u32 %s1088_s1, 4  ;;  %s930_s18 = smov [#allocation6]   ;;  %s30_s17 = int_to_ptr.hbm [resolvable:$true] %s29_s17 }
   0x3   :  { %s31_s19 = sshll.u32 %s930_s18, 4  ;;  %s16_s22 = sshll.u32 %s1087_s0, 4  ;;  %s32_s19 = int_to_ptr.vmem [resolvable:$true] %s31_s19  ;;  %s17_s22 = int_to_ptr.hbm [resolvable:$true] %s16_s22 }
   0x4   :  { %s931_s23 = smov 64   ;;  %s932_s24 = smov 4  }
   0x5   :  { %37 = dma.hbm_to_vmem [thread:$0]  %s30_s17, 128, %s32_s19, [#allocation7], %s931_s23, %s931_s23, %s932_s24  }
   0x6   :  { %s933_s25 = smov [#allocation3]   ;;  %s42_s1 = sshll.u32 %s1089_s2, 4  ;;  %s43_s1 = int_to_ptr.hbm [resolvable:$true] %s42_s1 }
   0x7   :  { %s18_s26 = sshll.u32 %s933_s25, 4  ;;  %s934_s29 = smov [#allocation8]   ;;  %s19_s26 = int_to_ptr.vmem [resolvable:$true] %s18_s26 }
   0x8   :  { %24 = dma.hbm_to_vmem [thread:$0]  %s17_s22, 512, %s19_s26, [#allocation4], %s931_s23, %s931_s23, %s932_s24  }
   0x9   :  { %s44_s30 = sshll.u32 %s934_s29, 4  ;;  %s45_s30 = int_to_ptr.vmem [resolvable:$true] %s44_s30 }
   0xa   :  { %50 = dma.hbm_to_vmem [thread:$0]  %s43_s1, 256, %s45_s30, [#allocation7], %s931_s23, %s931_s23, %s932_s24  }
   0xb   :  { %924 = dma.done.wait [#allocation4], 512  }
   0xc   :  { %925 = vsyncadd [#allocation4], 4294966784 }
   0xd   :  { %926 = dma.done.wait [#allocation7], 384  }
   0xe   :  { %927 = vsyncadd [#allocation7], 4294966912  ;;  %v751_v0 = vld [vmem:[#allocation6] sm:$0xff]  ;;  %v979_v1 = vld [vmem:[#allocation8 + $0x8] sm:$0xff]  ;;  %vm106_vm0 = vcmask 130048   ;;  %v935_v4 = vmov 0  }
   0xf   :  { %v747_v2 = vld [vmem:[#allocation3] sm:$0xff]  ;;  %126 = vmatpush.bf16.msra.mxu0 %v751_v0  ;;  %183 = vmatpush.bf16.msra.mxu1 %v979_v1  ;;  %v752_v3 = vld [vmem:[#allocation8] sm:$0xff]  ;;  %s936_s5 = smov 32   ;;  %vm173_vm5 = vcmask 261120   ;;  %s938_s6 = smov [#allocation9]  }
  0x10   :  { %243 = vmatpush.bf16.msra.mxu2 %v979_v1  ;;  %303 = vmatpush.bf16.msra.mxu3 %v979_v1  ;;  %v992_v5 = vld [vmem:[%s1090_s3] ss:$0 sm:$0xff]  ;;  %v748_v60 = vld [vmem:[#allocation3 + $0x8] sm:$0xff]  ;;  %s937_s3 = smov 96   ;;  %s687_s7 = sshll.u32 %s938_s6, 4  ;;  %s688_s7 = int_to_ptr.vmem [resolvable:$true] %s687_s7 }
  0x11   :  { %s689_s10 = sshll.u32 %s1091_s4, 4  ;;  %s690_s10 = int_to_ptr.hbm [resolvable:$true] %s689_s10 }
  0x12   :  { %720 = vmatmul.msk.bf16.vlgmr.msra.gmra.mxu0 %vm106_vm0, %v747_v2 }
  0x13   :  { %184 = vmatpush.bf16.msra.mxu1 %v752_v3 }
  0x14   :  { %244 = vmatpush.bf16.msra.mxu2 %v752_v3  ;;  %304 = vmatpush.bf16.msra.mxu3 %v752_v3 }
  0x16   :  { %185 = vmatmul.bf16.vlgmr.msra.gmra.mxu1 %v935_v4 }
  0x17   :  { %363 = vmatpush.bf16.msrb.mxu1 %v979_v1 }
  0x18   :  { %441 = vmatpush.bf16.msrb.mxu2 %v979_v1  ;;  %501 = vmatpush.bf16.msrb.mxu3 %v979_v1 }
  0x1b   :  { %364 = vmatpush.bf16.msrb.mxu1 %v752_v3 }
  0x1c   :  { %442 = vmatpush.bf16.msrb.mxu2 %v752_v3  ;;  %502 = vmatpush.bf16.msrb.mxu3 %v752_v3 }
  0x1f   :  { %561 = vmatpush.bf16.msra.mxu1 %v979_v1 }
  0x22   :  { %721 = vmatmul.msk.bf16.gmra.mxu0 %vm106_vm0, %v748_v60 }
  0x23   :  { %562 = vmatpush.bf16.msra.mxu1 %v752_v3 }
  0x8f   :  { %v128_v6 = vpop.f32.mrf.mxu0 }
  0x90   :  { %v129_v7 = vadd.f32 %v992_v5, %v128_v6 }
  0x93   :  { %v186_v8 = vpop.f32.mrf.mxu1 }
  0x94   :  { %v190_v9 = vadd.f32 %v186_v8, %v129_v7 }
  0x96   :  { %764 = vtanh.f32 %v190_v9  ;;  %v732_v12 = vmul.f32 -1.442695, %v190_v9 }
  0x97   :  { %v130_v35 = vpop.f32.mrf.mxu0 }
  0x98   :  { %766 = vpow2.f32 %v732_v12  ;;  %v131_v36 = vadd.f32 %v992_v5, %v130_v35 }
  0x9b   :  { %v188_v10 = vpop.f32.mrf.mxu1 }
  0x9c   :  { %v765_v11 = vpop.eup %764 }
  0x9d   :  { %213 = vrot.lane.b32.xlu0 %v765_v11, %s936_s5 }
  0x9e   :  { %v767_v13 = vpop.eup %766 }
  0x9f   :  { %v194_v14 = vadd.f32 1.0, %v767_v13 }
  0xa1   :  { %768 = vrcp.f32 %v194_v14  ;;  %v206_v20 = vand.u32 2147483648, %v194_v14  ;;  %vm200_vm2 = vweird.f32 %v194_v14  ;;  %v204_v21 = vand.u32 2147483647, %v194_v14 }
  0xa3   :  { %v207_v23 = vor.u32 1.1754944e-38, %v206_v20  ;;  %vm205_vm4 = vcmp.eq.f32.partialorder %v204_v21, 8.507059e+37 }
  0xa7   :  { %v769_v15 = vpop.eup %768 }
  0xa8   :  { %v196_v16 = vmul.f32 %v769_v15, %v194_v14  ;;  %vm201_vm1 = vweird.f32 %v769_v15 }
  0xa9   :  { %vm202_vm3 = vmor %vm200_vm2, %vm201_vm1 }
  0xaa   :  { %v197_v17 = vsub.f32 1.0, %v196_v16 }
  0xac   :  { %v198_v18 = vmul.f32 %v769_v15, %v197_v17 }
  0xae   :  { %v199_v19 = vadd.f32 %v769_v15, %v198_v18 }
  0xb0   :  { %v203_v22 = vsel %vm202_vm3, %v769_v15, %v199_v19 }
  0xb1   :  { %v208_v25 = vsel %vm205_vm4, %v207_v23, %v203_v22 }
  0xb2   :  { %v211_v27 = vmul.f32 0.0, %v208_v25 }
 0x10f   :  { %v214_v24 = vpop.permute.xlu0 %213 }
 0x110   :  { %v216_v26 = vmul.f32 %v214_v24, %v208_v25 }
 0x112   :  { %218 = vrot.lane.b32.xlu0 %v216_v26, %s936_s5 }
 0x184   :  { %v219_v28 = vpop.permute.xlu0 %218 }
 0x185   :  { %v221_v29 = vadd.f32 %v219_v28, %v211_v27 }
 0x187   :  { %770 = vtanh.f32 %v221_v29 }
 0x18d   :  { %v771_v30 = vpop.eup %770 }
 0x18e   :  { %224 = vrot.lane.b32.xlu1 %v771_v30, %s936_s5 }
 0x200   :  { %v225_v31 = vpop.permute.xlu1 %224 }
 0x201   :  { %v998_v32 = vmul.f32 %v225_v31, %v208_v25 }
 0x203   :  { %v230_v33 = vpack.c.bf16 %v998_v32, %v998_v32 }
 0x205   :  { %232 = vrot.lane.b32.xlu1 %v230_v33, %s931_s23 }
 0x277   :  { %v233_v34 = vpop.permute.xlu1 %232 }
 0x278   :  { %733 = vmatmul.msk.bf16.vlgmr.msra.gmra.mxu2 %vm173_vm5, %v233_v34 }
 0x279   :  { %621 = vmatpush.bf16.msra.mxu2 %v979_v1  ;;  %v133_v1 = vpop.f32.mrf.mxu0 }
 0x27a   :  { %v134_v2 = vadd.f32 %v992_v5, %v133_v1 }
 0x27d   :  { %622 = vmatpush.bf16.msra.mxu2 %v752_v3 }
 0x281   :  { %v135_v31 = vpop.f32.mrf.mxu0 }
 0x282   :  { %v136_v33 = vadd.f32 %v992_v5, %v135_v31 }
 0x2fb   :  { %v246_v37 = vpop.f32.mrf.mxu2 }
 0x2fc   :  { %v250_v38 = vadd.f32 %v246_v37, %v131_v36 }
 0x2fe   :  { %772 = vtanh.f32 %v250_v38  ;;  %v734_v41 = vmul.f32 -1.442695, %v250_v38 }
 0x300   :  { %774 = vpow2.f32 %v734_v41 }
 0x303   :  { %v248_v39 = vpop.f32.mrf.mxu2 }
 0x304   :  { %v773_v40 = vpop.eup %772 }
 0x305   :  { %273 = vrot.lane.b32.xlu2 %v773_v40, %s936_s5 }
 0x306   :  { %v775_v42 = vpop.eup %774 }
 0x307   :  { %v254_v43 = vadd.f32 1.0, %v775_v42 }
 0x309   :  { %776 = vrcp.f32 %v254_v43  ;;  %v266_v49 = vand.u32 2147483648, %v254_v43  ;;  %vm260_vm7 = vweird.f32 %v254_v43  ;;  %v264_v50 = vand.u32 2147483647, %v254_v43 }
 0x30b   :  { %v267_v52 = vor.u32 1.1754944e-38, %v266_v49  ;;  %vm265_vm9 = vcmp.eq.f32.partialorder %v264_v50, 8.507059e+37 }
 0x30f   :  { %v777_v44 = vpop.eup %776 }
 0x310   :  { %v256_v45 = vmul.f32 %v777_v44, %v254_v43  ;;  %vm261_vm6 = vweird.f32 %v777_v44 }
 0x311   :  { %vm262_vm8 = vmor %vm260_vm7, %vm261_vm6 }
 0x312   :  { %v257_v46 = vsub.f32 1.0, %v256_v45 }
 0x314   :  { %v258_v47 = vmul.f32 %v777_v44, %v257_v46 }
 0x316   :  { %v259_v48 = vadd.f32 %v777_v44, %v258_v47 }
 0x318   :  { %v263_v51 = vsel %vm262_vm8, %v777_v44, %v259_v48 }
 0x319   :  { %v268_v54 = vsel %vm265_vm9, %v267_v52, %v263_v51 }
 0x31a   :  { %v271_v56 = vmul.f32 %v268_v54, %v221_v29 }
 0x35f   :  { %v274_v53 = vpop.permute.xlu2 %273 }
 0x360   :  { %v276_v55 = vmul.f32 %v274_v53, %v268_v54 }
 0x362   :  { %278 = vrot.lane.b32.xlu2 %v276_v55, %s936_s5 }
 0x3bc   :  { %v279_v57 = vpop.permute.xlu2 %278 }
 0x3bd   :  { %v281_v58 = vadd.f32 %v279_v57, %v271_v56  ;;  %v749_v57 = vld [vmem:[#allocation3 + $0x10] sm:$0xff] }
 0x3be   :  { %722 = vmatmul.msk.bf16.gmra.mxu0 %vm106_vm0, %v749_v57 }
 0x3bf   :  { %778 = vtanh.f32 %v281_v58 }
 0x3c5   :  { %v779_v59 = vpop.eup %778 }
 0x3c6   :  { %284 = vrot.lane.b32.xlu0 %v779_v59, %s936_s5 }
 0x438   :  { %v285_v61 = vpop.permute.xlu0 %284 }
 0x439   :  { %v1010_v62 = vmul.f32 %v285_v61, %v268_v54 }
 0x43b   :  { %v290_v63 = vpack.c.bf16 %v1010_v62, %v1010_v62 }
 0x43d   :  { %292 = vrot.lane.b32.xlu1 %v290_v63, %s931_s23  ;;  %v138_v63 = vpop.f32.mrf.mxu0 }
 0x4af   :  { %v293_v0 = vpop.permute.xlu1 %292 }
 0x4b0   :  { %735 = vmatmul.msk.bf16.vlgmr.msra.gmra.mxu3 %vm173_vm5, %v293_v0  ;;  %v139_v0 = vadd.f32 %v992_v5, %v138_v63 }
 0x533   :  { %v306_v3 = vpop.f32.mrf.mxu3 }
 0x534   :  { %v310_v4 = vadd.f32 %v306_v3, %v134_v2 }
 0x536   :  { %780 = vtanh.f32 %v310_v4  ;;  %v736_v8 = vmul.f32 -1.442695, %v310_v4 }
 0x538   :  { %782 = vpow2.f32 %v736_v8 }
 0x53b   :  { %v308_v6 = vpop.f32.mrf.mxu3 }
 0x53c   :  { %v781_v7 = vpop.eup %780 }
 0x53d   :  { %333 = vrot.lane.b32.xlu2 %v781_v7, %s936_s5 }
 0x53e   :  { %v783_v9 = vpop.eup %782 }
 0x53f   :  { %v314_v10 = vadd.f32 1.0, %v783_v9 }
 0x541   :  { %784 = vrcp.f32 %v314_v10  ;;  %v326_v16 = vand.u32 2147483648, %v314_v10  ;;  %vm320_vm11 = vweird.f32 %v314_v10  ;;  %v324_v17 = vand.u32 2147483647, %v314_v10 }
 0x543   :  { %v327_v19 = vor.u32 1.1754944e-38, %v326_v16  ;;  %vm325_vm13 = vcmp.eq.f32.partialorder %v324_v17, 8.507059e+37 }
 0x547   :  { %v785_v11 = vpop.eup %784 }
 0x548   :  { %v316_v12 = vmul.f32 %v785_v11, %v314_v10  ;;  %vm321_vm10 = vweird.f32 %v785_v11 }
 0x549   :  { %vm322_vm12 = vmor %vm320_vm11, %vm321_vm10 }
 0x54a   :  { %v317_v13 = vsub.f32 1.0, %v316_v12 }
 0x54c   :  { %v318_v14 = vmul.f32 %v785_v11, %v317_v13 }
 0x54e   :  { %v319_v15 = vadd.f32 %v785_v11, %v318_v14 }
 0x550   :  { %v323_v18 = vsel %vm322_vm12, %v785_v11, %v319_v15 }
 0x551   :  { %v328_v21 = vsel %vm325_vm13, %v327_v19, %v323_v18 }
 0x552   :  { %v331_v23 = vmul.f32 %v328_v21, %v281_v58 }
 0x597   :  { %v334_v20 = vpop.permute.xlu2 %333 }
 0x598   :  { %v336_v22 = vmul.f32 %v334_v20, %v328_v21 }
 0x59a   :  { %338 = vrot.lane.b32.xlu0 %v336_v22, %s936_s5 }
 0x60c   :  { %v339_v24 = vpop.permute.xlu0 %338 }
 0x60d   :  { %v341_v25 = vadd.f32 %v339_v24, %v331_v23 }
 0x60f   :  { %786 = vtanh.f32 %v341_v25 }
 0x615   :  { %v787_v26 = vpop.eup %786 }
 0x616   :  { %344 = vrot.lane.b32.xlu1 %v787_v26, %s936_s5 }
 0x688   :  { %v345_v27 = vpop.permute.xlu1 %344 }
 0x689   :  { %v1020_v28 = vmul.f32 %v345_v27, %v328_v21 }
 0x68b   :  { %v350_v29 = vpack.c.bf16 %v1020_v28, %v1020_v28 }
 0x68d   :  { %352 = vrot.lane.b32.xlu2 %v350_v29, %s931_s23 }
 0x6e7   :  { %v353_v30 = vpop.permute.xlu2 %352 }
 0x6e8   :  { %737 = vmatmul.msk.bf16.vlgmr.msrb.gmra.mxu1 %vm173_vm5, %v353_v30  ;;  %v140_v30 = vpop.f32.mrf.mxu0 }
 0x6e9   :  { %v141_v31 = vadd.f32 %v992_v5, %v140_v30 }
 0x765   :  { %v366_v34 = vpop.f32.mrf.mxu1 }
 0x766   :  { %v370_v35 = vadd.f32 %v366_v34, %v136_v33 }
 0x768   :  { %788 = vtanh.f32 %v370_v35  ;;  %v738_v38 = vmul.f32 -1.442695, %v370_v35 }
 0x76a   :  { %790 = vpow2.f32 %v738_v38 }
 0x76d   :  { %v368_v36 = vpop.f32.mrf.mxu1 }
 0x76e   :  { %v789_v37 = vpop.eup %788 }
 0x76f   :  { %393 = vrot.lane.b32.xlu0 %v789_v37, %s936_s5 }
 0x770   :  { %v791_v39 = vpop.eup %790 }
 0x771   :  { %v374_v40 = vadd.f32 1.0, %v791_v39 }
 0x773   :  { %792 = vrcp.f32 %v374_v40  ;;  %v386_v46 = vand.u32 2147483648, %v374_v40  ;;  %vm380_vm15 = vweird.f32 %v374_v40  ;;  %v384_v47 = vand.u32 2147483647, %v374_v40 }
 0x775   :  { %v387_v49 = vor.u32 1.1754944e-38, %v386_v46  ;;  %vm385_vm2 = vcmp.eq.f32.partialorder %v384_v47, 8.507059e+37 }
 0x779   :  { %v793_v41 = vpop.eup %792 }
 0x77a   :  { %v376_v42 = vmul.f32 %v793_v41, %v374_v40  ;;  %vm381_vm14 = vweird.f32 %v793_v41 }
 0x77b   :  { %vm382_vm1 = vmor %vm380_vm15, %vm381_vm14 }
 0x77c   :  { %v377_v43 = vsub.f32 1.0, %v376_v42 }
 0x77e   :  { %v378_v44 = vmul.f32 %v793_v41, %v377_v43 }
 0x780   :  { %v379_v45 = vadd.f32 %v793_v41, %v378_v44 }
 0x782   :  { %v383_v48 = vsel %vm382_vm1, %v793_v41, %v379_v45 }
 0x783   :  { %v388_v51 = vsel %vm385_vm2, %v387_v49, %v383_v48 }
 0x784   :  { %v391_v53 = vmul.f32 %v388_v51, %v341_v25 }
 0x7e1   :  { %v394_v50 = vpop.permute.xlu0 %393 }
 0x7e2   :  { %v396_v52 = vmul.f32 %v394_v50, %v388_v51 }
 0x7e4   :  { %398 = vrot.lane.b32.xlu1 %v396_v52, %s936_s5 }
 0x856   :  { %v399_v54 = vpop.permute.xlu1 %398 }
 0x857   :  { %v401_v55 = vadd.f32 %v399_v54, %v391_v53 }
 0x859   :  { %794 = vtanh.f32 %v401_v55 }
 0x85f   :  { %v795_v56 = vpop.eup %794 }
 0x860   :  { %404 = vrot.lane.b32.xlu2 %v795_v56, %s936_s5  ;;  %v750_v56 = vld [vmem:[#allocation3 + $0x18] sm:$0xff] }
 0x861   :  { %723 = vmatmul.msk.bf16.gmra.mxu0 %vm106_vm0, %v750_v56 }
 0x8ba   :  { %v405_v58 = vpop.permute.xlu2 %404 }
 0x8bb   :  { %v1031_v59 = vmul.f32 %v405_v58, %v388_v51 }
 0x8bd   :  { %v428_v60 = vpack.c.bf16 %v1031_v59, %v1031_v59 }
 0x8bf   :  { %430 = vrot.lane.b32.xlu0 %v428_v60, %s931_s23 }
 0x8de   :  { %v143_v63 = vpop.f32.mrf.mxu0 }
 0x931   :  { %v431_v61 = vpop.permute.xlu0 %430 }
 0x932   :  { %739 = vmatmul.msk.bf16.vlgmr.msrb.gmra.mxu2 %vm173_vm5, %v431_v61 }
 0x9b5   :  { %v444_v1 = vpop.f32.mrf.mxu2 }
 0x9b6   :  { %v448_v2 = vadd.f32 %v444_v1, %v139_v0  ;;  %v144_v0 = vadd.f32 %v992_v5, %v143_v63 }
 0x9b8   :  { %796 = vtanh.f32 %v448_v2  ;;  %v740_v6 = vmul.f32 -1.442695, %v448_v2 }
 0x9ba   :  { %798 = vpow2.f32 %v740_v6 }
 0x9bd   :  { %v446_v3 = vpop.f32.mrf.mxu2 }
 0x9be   :  { %v797_v4 = vpop.eup %796 }
 0x9bf   :  { %471 = vrot.lane.b32.xlu1 %v797_v4, %s936_s5 }
 0x9c0   :  { %v799_v7 = vpop.eup %798 }
 0x9c1   :  { %v452_v8 = vadd.f32 1.0, %v799_v7 }
 0x9c3   :  { %800 = vrcp.f32 %v452_v8  ;;  %v464_v14 = vand.u32 2147483648, %v452_v8  ;;  %vm458_vm4 = vweird.f32 %v452_v8  ;;  %v462_v15 = vand.u32 2147483647, %v452_v8 }
 0x9c5   :  { %v465_v17 = vor.u32 1.1754944e-38, %v464_v14  ;;  %vm463_vm7 = vcmp.eq.f32.partialorder %v462_v15, 8.507059e+37 }
 0x9c9   :  { %v801_v9 = vpop.eup %800 }
 0x9ca   :  { %v454_v10 = vmul.f32 %v801_v9, %v452_v8  ;;  %vm459_vm3 = vweird.f32 %v801_v9 }
 0x9cb   :  { %vm460_vm6 = vmor %vm458_vm4, %vm459_vm3  ;;  %vm421_vm4 = vcmask 523264  }
 0x9cc   :  { %v455_v11 = vsub.f32 1.0, %v454_v10 }
 0x9ce   :  { %v456_v12 = vmul.f32 %v801_v9, %v455_v11 }
 0x9d0   :  { %v457_v13 = vadd.f32 %v801_v9, %v456_v12 }
 0x9d2   :  { %v461_v16 = vsel %vm460_vm6, %v801_v9, %v457_v13  ;;  %vm423_vm6 = vcmask 785408  }
 0x9d3   :  { %v466_v19 = vsel %vm463_vm7, %v465_v17, %v461_v16 }
 0x9d4   :  { %v469_v21 = vmul.f32 %v466_v19, %v401_v55 }
 0xa31   :  { %v472_v18 = vpop.permute.xlu1 %471 }
 0xa32   :  { %v474_v20 = vmul.f32 %v472_v18, %v466_v19 }
 0xa34   :  { %476 = vrot.lane.b32.xlu2 %v474_v20, %s936_s5 }
 0xa8e   :  { %v477_v22 = vpop.permute.xlu2 %476 }
 0xa8f   :  { %v479_v23 = vadd.f32 %v477_v22, %v469_v21 }
 0xa91   :  { %802 = vtanh.f32 %v479_v23 }
 0xa97   :  { %v803_v24 = vpop.eup %802 }
 0xa98   :  { %482 = vrot.lane.b32.xlu0 %v803_v24, %s936_s5 }
 0xb0a   :  { %v483_v25 = vpop.permute.xlu0 %482 }
 0xb0b   :  { %v1041_v26 = vmul.f32 %v483_v25, %v466_v19 }
 0xb0d   :  { %v488_v27 = vpack.c.bf16 %v1041_v26, %v1041_v26 }
 0xb0f   :  { %490 = vrot.lane.b32.xlu1 %v488_v27, %s931_s23 }
 0xb81   :  { %v491_v29 = vpop.permute.xlu1 %490 }
 0xb82   :  { %741 = vmatmul.msk.bf16.vlgmr.msrb.gmra.mxu3 %vm173_vm5, %v491_v29 }
 0xc05   :  { %v504_v33 = vpop.f32.mrf.mxu3 }
 0xc06   :  { %v508_v34 = vadd.f32 %v504_v33, %v141_v31  ;;  %v145_v31 = vpop.f32.mrf.mxu0 }
 0xc07   :  { %v146_v33 = vadd.f32 %v992_v5, %v145_v31 }
 0xc08   :  { %804 = vtanh.f32 %v508_v34  ;;  %v742_v37 = vmul.f32 -1.442695, %v508_v34 }
 0xc0a   :  { %806 = vpow2.f32 %v742_v37 }
 0xc0d   :  { %v506_v35 = vpop.f32.mrf.mxu3 }
 0xc0e   :  { %v805_v36 = vpop.eup %804 }
 0xc0f   :  { %531 = vrot.lane.b32.xlu2 %v805_v36, %s936_s5 }
 0xc10   :  { %v807_v38 = vpop.eup %806 }
 0xc11   :  { %v512_v39 = vadd.f32 1.0, %v807_v38 }
 0xc13   :  { %808 = vrcp.f32 %v512_v39  ;;  %v524_v45 = vand.u32 2147483648, %v512_v39  ;;  %vm518_vm9 = vweird.f32 %v512_v39  ;;  %v522_v46 = vand.u32 2147483647, %v512_v39 }
 0xc15   :  { %v525_v48 = vor.u32 1.1754944e-38, %v524_v45  ;;  %vm523_vm11 = vcmp.eq.f32.partialorder %v522_v46, 8.507059e+37 }
 0xc19   :  { %v809_v40 = vpop.eup %808 }
 0xc1a   :  { %v514_v41 = vmul.f32 %v809_v40, %v512_v39  ;;  %vm519_vm8 = vweird.f32 %v809_v40 }
 0xc1b   :  { %vm520_vm10 = vmor %vm518_vm9, %vm519_vm8 }
 0xc1c   :  { %v515_v42 = vsub.f32 1.0, %v514_v41 }
 0xc1e   :  { %v516_v43 = vmul.f32 %v809_v40, %v515_v42 }
 0xc20   :  { %v517_v44 = vadd.f32 %v809_v40, %v516_v43 }
 0xc22   :  { %v521_v47 = vsel %vm520_vm10, %v809_v40, %v517_v44 }
 0xc23   :  { %v526_v50 = vsel %vm523_vm11, %v525_v48, %v521_v47 }
 0xc24   :  { %v529_v52 = vmul.f32 %v526_v50, %v479_v23 }
 0xc69   :  { %v532_v49 = vpop.permute.xlu2 %531 }
 0xc6a   :  { %v534_v51 = vmul.f32 %v532_v49, %v526_v50 }
 0xc6c   :  { %536 = vrot.lane.b32.xlu0 %v534_v51, %s936_s5 }
 0xcde   :  { %v537_v53 = vpop.permute.xlu0 %536 }
 0xcdf   :  { %v539_v54 = vadd.f32 %v537_v53, %v529_v52 }
 0xce1   :  { %810 = vtanh.f32 %v539_v54 }
 0xce7   :  { %v811_v55 = vpop.eup %810 }
 0xce8   :  { %542 = vrot.lane.b32.xlu1 %v811_v55, %s936_s5 }
 0xd5a   :  { %v543_v57 = vpop.permute.xlu1 %542 }
 0xd5b   :  { %v545_v58 = vmul.f32 %v543_v57, %v526_v50 }
 0xd5d   :  { %v548_v60 = vpack.c.bf16 %v545_v58, %v545_v58 }
 0xd5f   :  { %550 = vrot.lane.b32.xlu2 %v548_v60, %s931_s23 }
 0xdb9   :  { %v551_v61 = vpop.permute.xlu2 %550 }
 0xdba   :  { %743 = vmatmul.msk.bf16.vlgmr.msra.gmra.mxu1 %vm173_vm5, %v551_v61 }
 0xe37   :  { %v564_v1 = vpop.f32.mrf.mxu1 }
 0xe38   :  { %v568_v2 = vadd.f32 %v564_v1, %v144_v0 }
 0xe3a   :  { %812 = vtanh.f32 %v568_v2  ;;  %v744_v6 = vmul.f32 -1.442695, %v568_v2 }
 0xe3c   :  { %814 = vpow2.f32 %v744_v6 }
 0xe3f   :  { %v566_v3 = vpop.f32.mrf.mxu1 }
 0xe40   :  { %v813_v4 = vpop.eup %812 }
 0xe41   :  { %591 = vrot.lane.b32.xlu0 %v813_v4, %s936_s5 }
 0xe42   :  { %v815_v7 = vpop.eup %814 }
 0xe43   :  { %v572_v8 = vadd.f32 1.0, %v815_v7 }
 0xe45   :  { %816 = vrcp.f32 %v572_v8  ;;  %v584_v14 = vand.u32 2147483648, %v572_v8  ;;  %vm578_vm12 = vweird.f32 %v572_v8  ;;  %v582_v15 = vand.u32 2147483647, %v572_v8 }
 0xe47   :  { %v585_v17 = vor.u32 1.1754944e-38, %v584_v14  ;;  %vm583_vm14 = vcmp.eq.f32.partialorder %v582_v15, 8.507059e+37 }
 0xe4b   :  { %v817_v9 = vpop.eup %816 }
 0xe4c   :  { %v574_v10 = vmul.f32 %v817_v9, %v572_v8  ;;  %vm579_vm0 = vweird.f32 %v817_v9 }
 0xe4d   :  { %vm580_vm13 = vmor %vm578_vm12, %vm579_vm0 }
 0xe4e   :  { %v575_v11 = vsub.f32 1.0, %v574_v10 }
 0xe50   :  { %v576_v12 = vmul.f32 %v817_v9, %v575_v11 }
 0xe52   :  { %v577_v13 = vadd.f32 %v817_v9, %v576_v12 }
 0xe54   :  { %v581_v16 = vsel %vm580_vm13, %v817_v9, %v577_v13 }
 0xe55   :  { %v586_v19 = vsel %vm583_vm14, %v585_v17, %v581_v16 }
 0xe56   :  { %v589_v21 = vmul.f32 %v586_v19, %v539_v54 }
 0xeb3   :  { %v592_v18 = vpop.permute.xlu0 %591 }
 0xeb4   :  { %v594_v20 = vmul.f32 %v592_v18, %v586_v19 }
 0xeb6   :  { %596 = vrot.lane.b32.xlu1 %v594_v20, %s936_s5 }
 0xf28   :  { %v597_v22 = vpop.permute.xlu1 %596 }
 0xf29   :  { %v599_v23 = vadd.f32 %v597_v22, %v589_v21 }
 0xf2b   :  { %818 = vtanh.f32 %v599_v23 }
 0xf31   :  { %v819_v24 = vpop.eup %818 }
 0xf32   :  { %602 = vrot.lane.b32.xlu2 %v819_v24, %s936_s5 }
 0xf8c   :  { %v603_v25 = vpop.permute.xlu2 %602 }
 0xf8d   :  { %v1058_v27 = vmul.f32 %v603_v25, %v586_v19 }
 0xf8f   :  { %v608_v29 = vpack.c.bf16 %v1058_v27, %v1058_v27 }
 0xf91   :  { %610 = vrot.lane.b32.xlu0 %v608_v29, %s931_s23 }
0x1003   :  { %v611_v30 = vpop.permute.xlu0 %610 }
0x1004   :  { %745 = vmatmul.msk.bf16.vlgmr.msra.gmra.mxu2 %vm173_vm5, %v611_v30 }
0x1087   :  { %v624_v34 = vpop.f32.mrf.mxu2 }
0x1088   :  { %v628_v35 = vadd.f32 %v624_v34, %v146_v33 }
0x108a   :  { %820 = vtanh.f32 %v628_v35  ;;  %v746_v38 = vmul.f32 -1.442695, %v628_v35 }
0x108c   :  { %822 = vpow2.f32 %v746_v38 }
0x108f   :  { %v626_v36 = vpop.f32.mrf.mxu2 }
0x1090   :  { %v821_v37 = vpop.eup %820 }
0x1091   :  { %651 = vrot.lane.b32.xlu1 %v821_v37, %s936_s5 }
0x1092   :  { %v823_v39 = vpop.eup %822 }
0x1093   :  { %v632_v40 = vadd.f32 1.0, %v823_v39 }
0x1095   :  { %824 = vrcp.f32 %v632_v40  ;;  %v644_v45 = vand.u32 2147483648, %v632_v40  ;;  %vm638_vm1 = vweird.f32 %v632_v40  ;;  %v642_v46 = vand.u32 2147483647, %v632_v40 }
0x1097   :  { %v645_v48 = vor.u32 1.1754944e-38, %v644_v45  ;;  %vm643_vm3 = vcmp.eq.f32.partialorder %v642_v46, 8.507059e+37 }
0x1099   :  { %409 = vrot.lane.b32.xlu1 %v998_v32, %s931_s23 }
0x109b   :  { %v825_v41 = vpop.eup %824 }
0x109c   :  { %v634_v42 = vmul.f32 %v825_v41, %v632_v40  ;;  %vm639_vm15 = vweird.f32 %v825_v41 }
0x109d   :  { %vm640_vm2 = vmor %vm638_vm1, %vm639_vm15 }
0x109e   :  { %v635_v5 = vsub.f32 1.0, %v634_v42 }
0x10a0   :  { %v636_v43 = vmul.f32 %v825_v41, %v635_v5 }
0x10a1   :  { %671 = vrot.lane.b32.xlu1 %v545_v58, %s937_s3 }
0x10a2   :  { %v637_v44 = vadd.f32 %v825_v41, %v636_v43 }
0x10a4   :  { %v641_v47 = vsel %vm640_vm2, %v825_v41, %v637_v44 }
0x10a5   :  { %v646_v49 = vsel %vm643_vm3, %v645_v48, %v641_v47 }
0x10a6   :  { %v649_v51 = vmul.f32 %v646_v49, %v599_v23 }
0x1103   :  { %v652_v32 = vpop.permute.xlu1 %651 }
0x1104   :  { %v654_v50 = vmul.f32 %v652_v32, %v646_v49 }
0x1106   :  { %656 = vrot.lane.b32.xlu2 %v654_v50, %s936_s5 }
0x110b   :  { %v410_v56 = vpop.permute.xlu1 %409 }
0x110e   :  { %413 = vrot.lane.b32.xlu2 %v1010_v62, %s937_s3 }
0x1113   :  { %v672_v0 = vpop.permute.xlu1 %671 }
0x1116   :  { %417 = vrot.lane.b32.xlu2 %v1031_v59, %s936_s5 }
0x1160   :  { %v657_v52 = vpop.permute.xlu2 %656 }
0x1161   :  { %v659_v53 = vadd.f32 %v657_v52, %v649_v51 }
0x1163   :  { %826 = vtanh.f32 %v659_v53 }
0x1168   :  { %v414_v54 = vpop.permute.xlu2 %413 }
0x1169   :  { %v827_v55 = vpop.eup %826  ;;  %v420_v57 = vsel %vm173_vm5, %v410_v56, %v414_v54 }
0x116a   :  { %662 = vrot.lane.b32.xlu0 %v827_v55, %s936_s5  ;;  %v422_v58 = vsel %vm421_vm4, %v420_v57, %v1020_v28 }
0x1170   :  { %v418_v62 = vpop.permute.xlu2 %417 }
0x1171   :  { %v424_v60 = vsel %vm423_vm6, %v422_v58, %v418_v62 }
0x1172   :  { %425 = vst [vmem:[#allocation9] sm:$0xff] %v424_v60  ;;  %667 = vrot.lane.b32.xlu0 %v1041_v26, %s931_s23 }
0x11dc   :  { %v663_v59 = vpop.permute.xlu0 %662 }
0x11dd   :  { %v665_v61 = vmul.f32 %v663_v59, %v646_v49 }
0x11df   :  { %675 = vrot.lane.b32.xlu0 %v665_v61, %s936_s5 }
0x11e4   :  { %v668_v63 = vpop.permute.xlu0 %667 }
0x11e5   :  { %v678_v1 = vsel %vm173_vm5, %v668_v63, %v672_v0 }
0x11e6   :  { %v679_v28 = vsel %vm421_vm4, %v678_v1, %v1058_v27 }
0x1251   :  { %v676_v2 = vpop.permute.xlu0 %675 }
0x1252   :  { %v680_v26 = vsel %vm423_vm6, %v679_v28, %v676_v2 }
0x1253   :  { %681 = vst [vmem:[#allocation9 + $0x8] sm:$0xff] %v680_v26 }
0x1254   :  { %692 = dma.vmem_to_hbm [thread:$0]  %s688_s7, 256, %s690_s10, [#allocation5]  }
0x1255   :  { %928 = dma.done.wait [#allocation5], 256  }
0x1256   :  { %929 = vsyncadd [#allocation5], 4294967040 }
0x1257   :  { %697 = vsyncpa [#allocation4], 1 }
0x1258   :  { %698 = vsyncpa [#allocation7], 1 }
0x1259   :  { %699 = vsyncpa [#allocation5], 1 }

</bundles_post_ra>
